<compile_context>
chip_gen: v7x
topology: tpu7x:2x2x1
jax: 0.10.0
libtpu: 0.0.40
codegen_flags: <defaults>
</compile_context>

<pallas_src>
import functools
import math

import jax
import jax.numpy as jnp
from jax import lax
from jax.experimental import pallas as pl
from jax.experimental.pallas import tpu as pltpu


# --------------------------------------------------------------------------
# helpers
# --------------------------------------------------------------------------
def _round_up(x, m):
    return ((x + m - 1) // m) * m


@functools.lru_cache(maxsize=None)
def _vmem_budgets():
    """(working-set budget, vmem_limit cap) in bytes, per TPU generation."""
    try:
        info = pltpu.get_tpu_info()
        vmem = int(getattr(info, "vmem_capacity_bytes", 64 << 20))
    except Exception:
        vmem = 64 << 20                       # conservative: assume v7x-class
    if vmem <= (80 << 20):                    # v7x: 64 MiB VMEM per TensorCore
        return 40 << 20, 56 << 20
    return 80 << 20, 100 << 20                # v5e / v6e: 128 MiB per core


def _probe_kernel(x_ref, o_ref):
    o_ref[...] = x_ref[...] + 1.0


@functools.lru_cache(maxsize=None)
def _single_buffer_supported():
    """One-shot probe: does this JAX build accept pipeline_mode=pl.Buffered(1)?"""
    try:
        out = pl.pallas_call(
            _probe_kernel,
            out_shape=jax.ShapeDtypeStruct((16, 128), jnp.float32),
            grid=(2,),
            in_specs=[pl.BlockSpec((8, 128), lambda i: (0, 0),
                                   pipeline_mode=pl.Buffered(1))],
            out_specs=pl.BlockSpec((8, 128), lambda i: (i, 0)),
        )(jnp.zeros((8, 128), jnp.float32))
        jax.block_until_ready(out)
        return True
    except Exception:
        return False


# --------------------------------------------------------------------------
# Pallas kernel: fused residual + linear + 1/sqrt(d) scale   (Fk / Fq fusion)
# --------------------------------------------------------------------------
def _fused_residual_linear_kernel(x_ref, a_ref, w_ref, b_ref, o_ref, *, inv_scale):
    # aux_tile @ W^T on the MXU: contract the LAST dim of both operands so the
    # weight is used in its native (out_features, in_features) layout.
    proj = lax.dot_general(
        a_ref[...],
        w_ref[...],
        dimension_numbers=(((1,), (1,)), ((), ())),
        preferred_element_type=jnp.float32,
    )
    # (proj + b) * inv_scale, then residual add — VPU work hidden under HBM DMA.
    o_ref[...] = (
        x_ref[...].astype(jnp.float32)
        + (proj + b_ref[...].astype(jnp.float32)) * inv_scale
    ).astype(o_ref.dtype)


def fused_residual_linear_ref(x, aux, weight, bias):
    """Pure-JAX reference matching the PyTorch FkFusion / FqFusion forward."""
    d_model = x.shape[-1]
    proj = jnp.einsum("...i,oi->...o", aux, weight) + bias
    return x + proj / math.sqrt(d_model)


def fused_residual_linear(x, aux, weight, bias, *, block_rows=4096,
                          min_rows_for_pallas=1024):
    """out = x + (aux @ weight.T + bias) / sqrt(d_model)  (FkFusion / FqFusion).

    x: (..., d_model); aux: (..., d_in); weight: (d_model, d_in); bias: (d_model,).
    """
    assert aux.shape[:-1] == x.shape[:-1], "x / aux leading dims must match"
    orig_shape = x.shape
    d_model = int(x.shape[-1])
    d_in = int(aux.shape[-1])
    assert weight.shape == (d_model, d_in)
    assert bias.shape == (d_model,)
    inv_scale = 1.0 / math.sqrt(d_model)

    N = math.prod(x.shape[:-1])
    # Small-N fast path: custom-call + DMA-setup overhead dwarfs fusion benefit
    # at the module's tiny decoder shapes; let XLA fuse the plain expression.
    if N < min_rows_for_pallas:
        return fused_residual_linear_ref(x, aux, weight, bias).astype(x.dtype)

    x2 = x.reshape(N, d_model)
    a2 = aux.reshape(N, d_in)

    # ---- lane-density fold: make the output last dim a multiple of 128 so
    # stores are unmasked.  F consecutive logical rows are folded into one
    # physical row (pure row-major reshape); the matching weight is the F-way
    # block-diagonal replication of W.
    F = 128 // math.gcd(d_model, 128)
    if F > 1 and (F * d_model > 2048 or F * F * d_model * d_in * 4 > (4 << 20)):
        F = 1  # awkward d_model: fall back to masked stores rather than blow up W
    Cm = F * d_model
    Cp = F * d_in

    if F == 1:
        w_k = weight                                   # native layout & dtype
        b_k = bias.reshape(1, d_model)
    else:
        eye = jnp.eye(F, dtype=weight.dtype)
        w_k = jnp.einsum("ij,mn->imjn", eye, weight).reshape(Cm, Cp)
        b_k = jnp.tile(bias, F).reshape(1, Cm)

    itemsize = jnp.dtype(x.dtype).itemsize
    aux_itemsize = jnp.dtype(aux.dtype).itemsize
    w_itemsize = jnp.dtype(w_k.dtype).itemsize
    sub = 8 * max(1, 4 // itemsize)                    # 8 (f32) / 16 (bf16)
    R = -(-N // F)                                     # folded rows

    single_buf_w = _single_buffer_supported()
    w_bufs = 1 if single_buf_w else 2
    resident = w_bufs * (Cm * Cp * w_itemsize
                         + Cm * jnp.dtype(b_k.dtype).itemsize)

    row_bytes = 2 * Cm * itemsize + Cp * aux_itemsize  # x + out + aux per row
    ws_budget, vmem_cap = _vmem_budgets()

    # ~8 MiB of streamed bytes per grid step (amortizes ~0.35 us step overhead).
    tm = max(sub, ((8 << 20) // row_bytes) // sub * sub)
    tm = min(tm, block_rows)
    # Keep the double-buffered streams + resident weight inside the per-gen budget.
    avail = max(ws_budget - resident, 2 * sub * row_bytes)
    tm = min(tm, max(sub, (avail // (2 * row_bytes)) // sub * sub))
    # Give both v7x TensorCores work (>= 2 grid steps) whenever possible.
    if R >= 2 * sub:
        tm = min(tm, _round_up(-(-R // 2), sub))
    tm = min(tm, _round_up(R, sub))

    Rp = _round_up(R, tm)
    Np = Rp * F
    if Np != N:                                        # zero-pad tail rows
        x2 = jnp.pad(x2, ((0, Np - N), (0, 0)))
        a2 = jnp.pad(a2, ((0, Np - N), (0, 0)))
    xf = x2.reshape(Rp, Cm)
    af = a2.reshape(Rp, Cp)

    grid = (Rp // tm,)
    ws = 2 * tm * row_bytes + resident
    vmem_limit = int(min(max(ws + (8 << 20), 32 << 20), vmem_cap))

    if single_buf_w:
        w_spec = pl.BlockSpec((Cm, Cp), lambda i: (0, 0),
                              pipeline_mode=pl.Buffered(1))
        b_spec = pl.BlockSpec((1, Cm), lambda i: (0, 0),
                              pipeline_mode=pl.Buffered(1))
    else:
        w_spec = pl.BlockSpec((Cm, Cp), lambda i: (0, 0))
        b_spec = pl.BlockSpec((1, Cm), lambda i: (0, 0))

    out = pl.pallas_call(
        functools.partial(_fused_residual_linear_kernel, inv_scale=inv_scale),
        out_shape=jax.ShapeDtypeStruct((Rp, Cm), x.dtype),
        grid=grid,
        in_specs=[
            pl.BlockSpec((tm, Cm), lambda i: (i, 0)),   # x tile       (streamed)
            pl.BlockSpec((tm, Cp), lambda i: (i, 0)),   # aux tile     (streamed)
            w_spec,                                     # weight       (resident)
            b_spec,                                     # bias         (resident)
        ],
        out_specs=pl.BlockSpec((tm, Cm), lambda i: (i, 0)),
        compiler_params=pltpu.CompilerParams(
            dimension_semantics=("parallel",),          # megacore sharding on v7x
            vmem_limit_bytes=vmem_limit,
        ),
    )(xf, af, w_k, b_k)

    out = out.reshape(Np, d_model)[:N]
    return out.reshape(orig_shape)


# --------------------------------------------------------------------------
# RepresentationDecoder forward (plain JAX, with the Pallas fusion plugged in)
# --------------------------------------------------------------------------
def _linear(x, w, b):
    return jnp.einsum("...i,oi->...o", x, w) + b


def _layer_norm(x, g, b, eps=1e-5):
    mu = x.mean(-1, keepdims=True)
    var = ((x - mu) ** 2).mean(-1, keepdims=True)
    return (x - mu) * lax.rsqrt(var + eps) * g + b


def _mha(q, k, v, p, nhead):
    """torch.nn.MultiheadAttention(batch_first=True) forward."""
    B, Tq, D = q.shape
    Tk = k.shape[1]
    dh = D // nhead
    wq, wk, wv = jnp.split(p["in_proj_weight"], 3, axis=0)
    bq, bk, bv = jnp.split(p["in_proj_bias"], 3, axis=0)
    qh = _linear(q, wq, bq).reshape(B, Tq, nhead, dh).transpose(0, 2, 1, 3)
    kh = _linear(k, wk, bk).reshape(B, Tk, nhead, dh).transpose(0, 2, 1, 3)
    vh = _linear(v, wv, bv).reshape(B, Tk, nhead, dh).transpose(0, 2, 1, 3)
    scores = jnp.einsum("bhqd,bhkd->bhqk", qh, kh) / math.sqrt(dh)
    attn = jax.nn.softmax(scores, axis=-1)
    ctx = jnp.einsum("bhqk,bhkd->bhqd", attn, vh)
    ctx = ctx.transpose(0, 2, 1, 3).reshape(B, Tq, D)
    return _linear(ctx, p["out_proj_weight"], p["out_proj_bias"])


def sw_decoder_block(p, x_dec, x_fea, q_aux_vec, k_pos, *, nhead, fusion_fn):
    Q = fusion_fn(x_dec, q_aux_vec, p["fq_w"], p["fq_b"])   # FqFusion (Pallas)
    K = fusion_fn(x_fea, k_pos, p["fk_w"], p["fk_b"])       # FkFusion (Pallas)
    x2 = _mha(Q, K, K, p["cross_attn"], nhead)
    x = _layer_norm(x_dec + x2, p["norm1_g"], p["norm1_b"])
    x2 = _mha(x, x, x, p["self_attn"], nhead)
    x = _layer_norm(x + x2, p["norm2_g"], p["norm2_b"])
    x2 = _linear(jax.nn.relu(_linear(x, p["ffn_w1"], p["ffn_b1"])),
                 p["ffn_w2"], p["ffn_b2"])
    x = _layer_norm(x + x2, p["norm3_g"], p["norm3_b"])
    return x


def representation_decoder(params, x_dec, x_fea, q_aux, k_pos, *, nhead, fusion_fn):
    x_fea = _linear(x_fea, params["input_proj_w"], params["input_proj_b"])
    q_aux_pooled = q_aux.mean(-1, keepdims=True)
    q_aux_vec = _linear(q_aux_pooled, params["qaux_proj_w"], params["qaux_proj_b"])
    for lp in params["layers"]:
        x_dec = sw_decoder_block(lp, x_dec, x_fea, q_aux_vec, k_pos,
                                 nhead=nhead, fusion_fn=fusion_fn)
    return _linear(x_dec, params["out_proj_w"], params["out_proj_b"])


# --------------------------------------------------------------------------
# deterministic parameter construction (synthetic nn.Linear-style init)
# --------------------------------------------------------------------------
def _init_linear(key, d_out, d_in):
    kw, kb = jax.random.split(key)
    bound = 1.0 / math.sqrt(d_in)
    w = jax.random.uniform(kw, (d_out, d_in), jnp.float32, -bound, bound)
    b = jax.random.uniform(kb, (d_out,), jnp.float32, -bound, bound)
    return w, b


def _init_mha(key, d_model):
    k1, k2 = jax.random.split(key)
    in_w, in_b = _init_linear(k1, 3 * d_model, d_model)
    out_w, out_b = _init_linear(k2, d_model, d_model)
    return {"in_proj_weight": in_w, "in_proj_bias": in_b,
            "out_proj_weight": out_w, "out_proj_bias": out_b}


def init_representation_decoder(key, *, d_model, d_feat, nhead, d_ff, num_layers,
                                d_aux, d_pos, out_dim):
    keys = jax.random.split(key, 3 + num_layers)
    ip_w, ip_b = _init_linear(keys[0], d_model, d_feat)
    qa_w, qa_b = _init_linear(keys[1], d_aux, 1)
    op_w, op_b = _init_linear(keys[2], out_dim, d_model)
    layers = []
    for i in range(num_layers):
        lk = jax.random.split(keys[3 + i], 6)
        fq_w, fq_b = _init_linear(lk[0], d_model, d_aux)
        fk_w, fk_b = _init_linear(lk[1], d_model, d_pos)
        ffn_w1, ffn_b1 = _init_linear(lk[2], d_ff, d_model)
        ffn_w2, ffn_b2 = _init_linear(lk[3], d_model, d_ff)
        ones = jnp.ones((d_model,), jnp.float32)
        zeros = jnp.zeros((d_model,), jnp.float32)
        layers.append({
            "fq_w": fq_w, "fq_b": fq_b, "fk_w": fk_w, "fk_b": fk_b,
            "cross_attn": _init_mha(lk[4], d_model),
            "self_attn": _init_mha(lk[5], d_model),
            "ffn_w1": ffn_w1, "ffn_b1": ffn_b1,
            "ffn_w2": ffn_w2, "ffn_b2": ffn_b2,
            "norm1_g": ones, "norm1_b": zeros,
            "norm2_g": ones, "norm2_b": zeros,
            "norm3_g": ones, "norm3_b": zeros,
        })
    return {"input_proj_w": ip_w, "input_proj_b": ip_b,
            "qaux_proj_w": qa_w, "qaux_proj_b": qa_b,
            "out_proj_w": op_w, "out_proj_b": op_b,
            "layers": layers}


# --------------------------------------------------------------------------
if __name__ == "__main__":
    B, T_DEC, T_FEA = 2, 8, 16
    D_MODEL, D_FEAT, NHEAD, D_FF = 32, 40, 4, 64
    NUM_LAYERS, D_AUX, D_POS, OUT_DIM = 2, 8, 16, 24

    root = jax.random.PRNGKey(0)
    k_in1, k_in2, k_in3, k_in4, k_par, k_t1, k_t2 = jax.random.split(root, 7)

    x_dec = jax.random.normal(k_in1, (B, T_DEC, D_MODEL), jnp.float32)
    x_fea = jax.random.normal(k_in2, (B, T_FEA, D_FEAT), jnp.float32)
    q_aux = jax.random.normal(k_in3, (B, T_DEC, 5), jnp.float32)
    k_pos = jax.random.normal(k_in4, (B, T_FEA, D_POS), jnp.float32)

    params = init_representation_decoder(
        k_par, d_model=D_MODEL, d_feat=D_FEAT, nhead=NHEAD, d_ff=D_FF,
        num_layers=NUM_LAYERS, d_aux=D_AUX, d_pos=D_POS, out_dim=OUT_DIM)

    # force the Pallas path even at tiny row counts so the kernel is exercised
    fused_pallas = functools.partial(fused_residual_linear, min_rows_for_pallas=0)
    fused_jit = jax.jit(fused_pallas)

    # 1) FkFusion kernel check at the module's small shapes
    #    (d_model=32 exercises the lane-dense fold: 4 rows per 128-wide row).
    ka, kb_, kc = jax.random.split(k_t1, 3)
    xs = jax.random.normal(ka, (B, T_FEA, D_MODEL), jnp.float32)
    ps = jax.random.normal(kb_, (B, T_FEA, D_POS), jnp.float32)
    w, b = _init_linear(kc, D_MODEL, D_POS)
    out = fused_jit(xs, ps, w, b)
    ref = fused_residual_linear_ref(xs, ps, w, b)
    assert out.shape == ref.shape
    assert jnp.allclose(out, ref, atol=1e-4, rtol=1e-4)

    # 2) larger shape exercising the row-tiled pipeline (grid >= 2 on every gen)
    #    plus the default small-N threshold (N=1200 >= 1024 -> Pallas path).
    kd, ke, kf = jax.random.split(k_t2, 3)
    xs2 = jax.random.normal(kd, (2, 600, 128), jnp.float32)
    ps2 = jax.random.normal(ke, (2, 600, 128), jnp.float32)
    w2, b2 = _init_linear(kf, 128, 128)
    out2 = jax.jit(fused_residual_linear)(xs2, ps2, w2, b2)
    ref2 = fused_residual_linear_ref(xs2, ps2, w2, b2)
    assert jnp.allclose(out2, ref2, atol=1e-4, rtol=1e-4)

    # 3) full RepresentationDecoder forward with the Pallas fusion in every layer,
    #    cross-checked against the same forward using the pure-JAX fusion.
    dec_pallas = jax.jit(functools.partial(
        representation_decoder, nhead=NHEAD, fusion_fn=fused_pallas))
    dec_ref = jax.jit(functools.partial(
        representation_decoder, nhead=NHEAD, fusion_fn=fused_residual_linear_ref))
    y = dec_pallas(params, x_dec, x_fea, q_aux, k_pos)
    y_ref = dec_ref(params, x_dec, x_fea, q_aux, k_pos)

    jax.block_until_ready((out, out2, y, y_ref))
    assert y.shape == (B, T_DEC, OUT_DIM)
    assert bool(jnp.all(jnp.isfinite(y)))
    assert jnp.allclose(y, y_ref, atol=1e-3, rtol=1e-3)

    print("KERNEL_OK")
</pallas_src>

<mosaic_0001>
module attributes {stable_mosaic.version = 11 : i64} {
  func.func @_fused_residual_linear_kernel(%arg0: i32, %arg1: memref<8x128xf32, #tpu.memory_space<vmem>>, %arg2: memref<8x64xf32, #tpu.memory_space<vmem>>, %arg3: memref<128x64xf32, #tpu.memory_space<vmem>>, %arg4: memref<1x128xf32, #tpu.memory_space<vmem>>, %arg5: memref<8x128xf32, #tpu.memory_space<vmem>>) attributes {dimension_semantics = [#tpu.dimension_semantics<parallel>], iteration_bounds = array<i64: 1>, scalar_prefetch = 0 : i64, scratch_operands = 0 : i64, tpu.core_type = #tpu.core_type<tc>, window_params = [{transform_indices = @transform_0, window_bounds = array<i64: 8, 128>}, {transform_indices = @transform_1, window_bounds = array<i64: 8, 64>}, {pipeline_mode = #tpu.pipeline_mode<synchronous>, transform_indices = @transform_2, window_bounds = array<i64: 128, 64>}, {pipeline_mode = #tpu.pipeline_mode<synchronous>, transform_indices = @transform_3, window_bounds = array<i64: 1, 128>}, {transform_indices = @transform_4, window_bounds = array<i64: 8, 128>}]} {
    %c0 = arith.constant 0 : index
    %c0_0 = arith.constant 0 : index
    %0 = vector.load %arg2[%c0, %c0_0] : memref<8x64xf32, #tpu.memory_space<vmem>>, vector<8x64xf32>
    %c0_1 = arith.constant 0 : index
    %c0_2 = arith.constant 0 : index
    %1 = vector.load %arg3[%c0_1, %c0_2] : memref<128x64xf32, #tpu.memory_space<vmem>>, vector<128x64xf32>
    %cst = arith.constant dense<0.000000e+00> : vector<8x128xf32>
    %2 = tpu.matmul %0, %1, %cst {dimension_numbers = #tpu.dot_dimension_numbers<[1], [1], [0], [0], [0, 0, 1, 0], [], []>} : vector<8x64xf32>, vector<128x64xf32>, vector<8x128xf32> -> vector<8x128xf32>
    %c0_3 = arith.constant 0 : index
    %c0_4 = arith.constant 0 : index
    %3 = vector.load %arg1[%c0_3, %c0_4] : memref<8x128xf32, #tpu.memory_space<vmem>>, vector<8x128xf32>
    %c0_5 = arith.constant 0 : index
    %c0_6 = arith.constant 0 : index
    %4 = vector.load %arg4[%c0_5, %c0_6] : memref<1x128xf32, #tpu.memory_space<vmem>>, vector<1x128xf32>
    %5 = vector.broadcast %4 : vector<1x128xf32> to vector<8x128xf32>
    %6 = arith.addf %2, %5 : vector<8x128xf32>
    %cst_7 = arith.constant 0.176776692 : f32
    %7 = vector.broadcast %cst_7 : f32 to vector<8x128xf32>
    %8 = arith.mulf %6, %7 : vector<8x128xf32>
    %9 = arith.addf %3, %8 : vector<8x128xf32>
    %c0_8 = arith.constant 0 : index
    %c0_9 = arith.constant 0 : index
    %10 = vector.load %arg5[%c0_8, %c0_9] : memref<8x128xf32, #tpu.memory_space<vmem>>, vector<8x128xf32>
    tpu.vector_store %arg5[%c0_8, %c0_9], %9 {strides = array<i32>} : memref<8x128xf32, #tpu.memory_space<vmem>>, vector<8x128xf32>,
    return
  }
  func.func @transform_0(%arg0: i32) -> (i32, i32) {
    %c0_i32 = arith.constant 0 : i32
    %c0_i32_0 = arith.constant 0 : i32
    return %arg0, %c0_i32 : i32, i32
  }
  func.func @transform_1(%arg0: i32) -> (i32, i32) {
    %c0_i32 = arith.constant 0 : i32
    %c0_i32_0 = arith.constant 0 : i32
    return %arg0, %c0_i32 : i32, i32
  }
  func.func @transform_2(%arg0: i32) -> (i32, i32) {
    %c0_i32 = arith.constant 0 : i32
    %c0_i32_0 = arith.constant 0 : i32
    %c0_i32_1 = arith.constant 0 : i32
    return %c0_i32, %c0_i32_0 : i32, i32
  }
  func.func @transform_3(%arg0: i32) -> (i32, i32) {
    %c0_i32 = arith.constant 0 : i32
    %c0_i32_0 = arith.constant 0 : i32
    %c0_i32_1 = arith.constant 0 : i32
    return %c0_i32, %c0_i32_0 : i32, i32
  }
  func.func @transform_4(%arg0: i32) -> (i32, i32) {
    %c0_i32 = arith.constant 0 : i32
    %c0_i32_0 = arith.constant 0 : i32
    return %arg0, %c0_i32 : i32, i32
  }
}

</mosaic_0001>

<bundles_post_ra>
// kernel: tile.8
= control target key start
LH: loop header
LB: loop body
LE: loop exit
PB: predicated region body
PF: predicated region fallthrough
CT: control target
= control target key end

     0   :  { %s22_s0 = inlined_call_operand.vmem [shape: f32[32], index: 0, kind: input, shape index: {}]   ;;  %s23_s1 = inlined_call_operand.vmem [shape: f32[4,32], index: 1, kind: output, shape index: {}]  }
   0x1   :  { %v4_v0 = vld [vmem:[%s22_s0] ss:$0 sm:$0xff] }
   0x2   :  { %5 = vst [vmem:[%s23_s1] sm:$0xf] %v4_v0 }

// kernel: tile.9
= control target key start
LH: loop header
LB: loop body
LE: loop exit
PB: predicated region body
PF: predicated region fallthrough
CT: control target
= control target key end

     0   :  { %vm7_vm0 = vcmask 261120   ;;  %s37_s8 = smov 32   ;;  %s38_s9 = smov 64   ;;  %vm13_vm1 = vcmask 1048320   ;;  %vm19_vm2 = vcmask 785920   ;;  %vm25_vm3 = vcmask 523520   ;;  %s55_s0 = inlined_call_operand.vmem [shape: f32[4,32], index: 0, kind: input, shape index: {}]   ;;  %s56_s1 = inlined_call_operand.vmem [shape: f32[1,128], index: 1, kind: output, shape index: {}]  }
   0x1   :  { %v4_v0 = vld [vmem:[%s55_s0] sm:$0xf]  ;;  %s36_s0 = smov 96  }
   0x2   :  { %5 = vst [vmem:[#allocation1] sm:$0xf] %v4_v0 }
   0x9   :  { %v10_v1 = vld [vmem:[#allocation1 + $0x3] sm:$0x1]   ;;  %v22_v2 = vld [vmem:[#allocation1 + $0x1] sm:$0x1]   ;;  %v6_v3 = vld [vmem:[#allocation1] sm:$0x1]  }
   0xa   :  { %11 = vrot.lane.b32.xlu0 %v10_v1, %s36_s0  ;;  %23 = vrot.lane.b32.xlu1 %v22_v2, %s37_s8  ;;  %v16_v4 = vld [vmem:[#allocation1 + $0x2] sm:$0x1]   ;;  %8 = vst.msk [vmem:[#allocation0] sm:$0x1] %vm7_vm0, %v6_v3  }
   0xe   :  { %17 = vrot.lane.b32.xlu0 %v16_v4, %s38_s9 }
  0x7c   :  { %v12_v5 = vpop.permute.xlu0 %11   ;;  %v24_v6 = vpop.permute.xlu1 %23  }
  0x7d   :  { %14 = vst.msk [vmem:[#allocation0] sm:$0x1] %vm13_vm1, %v12_v5  }
  0x80   :  { %v18_v7 = vpop.permute.xlu0 %17  }
  0x81   :  { %20 = vst.msk [vmem:[#allocation0] sm:$0x1] %vm19_vm2, %v18_v7  }
  0x82   :  { %26 = vst.msk [vmem:[#allocation0] sm:$0x1] %vm25_vm3, %v24_v6  }
  0x89   :  { %v30_v8 = vld [vmem:[#allocation0] sm:$0x1] }
  0x8a   :  { %32 = vst [vmem:[%s56_s1] sm:$0x1] %v30_v8 }

// kernel: fused_residual_linear.1
= control target key start
LH: loop header
LB: loop body
LE: loop exit
PB: predicated region body
PF: predicated region fallthrough
CT: control target
= control target key end

     0   :  { %vm42_vm0 = vcmask 523264   ;;  %v276_v0 = vmov 0.0|0.0   ;;  %vm277_vm2 = vmmov 0   ;;  %v278_v4 = vmov 0.0   ;;  %s387_s2 = inlined_call_operand.vmem [shape: f32[128,64], index: 2, kind: input, shape index: {}]   ;;  %s388_s1 = inlined_call_operand.vmem [shape: f32[8,64], index: 1, kind: input, shape index: {}]   ;;  %s389_s3 = inlined_call_operand.vmem [shape: f32[1,128], index: 3, kind: input, shape index: {}]   ;;  %s390_s0 = inlined_call_operand.vmem [shape: f32[8,128], index: 0, kind: input, shape index: {}]   ;;  %s391_s4 = inlined_call_operand.vmem [shape: f32[8,128], index: 4, kind: output, shape index: {}]  }
   0x1   :  { %241 = vmatprep.subr.bf16.mxu0 %v276_v0  ;;  %v18_v1 = vld [vmem:[%s387_s2] sm:$0xff]  ;;  %v19_v2 = vld [vmem:[%s387_s2 + $0x8] sm:$0xff]  ;;  %vm312_vm1 = vmpackc.low %vm42_vm0, %vm42_vm0  ;;  %238 = vmatprep.mubr.msk.f32.mxu0 %vm277_vm2, %v278_v4 }
   0x2   :  { %v242_v5 = vpack.c.bf16 %v19_v2, %v18_v1  ;;  %v20_v6 = vld [vmem:[%s387_s2 + $0x10] sm:$0xff]  ;;  %v21_v7 = vld [vmem:[%s387_s2 + $0x18] sm:$0xff]  ;;  %v22_v9 = vld [vmem:[%s387_s2 + $0x20] sm:$0xff] }
   0x3   :  { %v246_v8 = vpack.c.bf16 %v21_v7, %v20_v6  ;;  %v23_v10 = vld [vmem:[%s387_s2 + $0x28] sm:$0xff]  ;;  %v24_v12 = vld [vmem:[%s387_s2 + $0x30] sm:$0xff]  ;;  %v25_v13 = vld [vmem:[%s387_s2 + $0x38] sm:$0xff] }
   0x4   :  { %244 = vmatpush3.bf16.xpose.msk.msra.mxu0 %vm312_vm1, %v242_v5  ;;  %v250_v11 = vpack.c.bf16 %v23_v10, %v22_v9  ;;  %v254_v14 = vpack.c.bf16 %v25_v13, %v24_v12  ;;  %v26_v15 = vld [vmem:[%s387_s2 + $0x40] sm:$0xff]  ;;  %v27_v16 = vld [vmem:[%s387_s2 + $0x48] sm:$0xff]  ;;  %v28_v18 = vld [vmem:[%s387_s2 + $0x50] sm:$0xff] }
   0x5   :  { %245 = vmatprep.subr.bf16.mxu0 %v276_v0  ;;  %v258_v17 = vpack.c.bf16 %v27_v16, %v26_v15  ;;  %v29_v19 = vld [vmem:[%s387_s2 + $0x58] sm:$0xff]  ;;  %v30_v21 = vld [vmem:[%s387_s2 + $0x60] sm:$0xff]  ;;  %v31_v22 = vld [vmem:[%s387_s2 + $0x68] sm:$0xff] }
   0x6   :  { %v262_v20 = vpack.c.bf16 %v29_v19, %v28_v18  ;;  %v266_v23 = vpack.c.bf16 %v31_v22, %v30_v21  ;;  %v32_v24 = vld [vmem:[%s387_s2 + $0x70] sm:$0xff]  ;;  %v33_v25 = vld [vmem:[%s387_s2 + $0x78] sm:$0xff]  ;;  %v17_v27 = vld [vmem:[%s388_s1] sm:$0xff] }
   0x7   :  { %v270_v26 = vpack.c.bf16 %v33_v25, %v32_v24  ;;  %v171_v28 = vld [vmem:[%s389_s3] ss:$0 sm:$0xff] }
   0x8   :  { %v34_v32 = vld [vmem:[%s390_s0] sm:$0xff] }
   0xc   :  { %248 = vmatpush3.bf16.xpose.msk.msra.mxu0 %vm312_vm1, %v246_v8 }
   0xd   :  { %249 = vmatprep.subr.bf16.mxu0 %v276_v0 }
  0x14   :  { %252 = vmatpush3.bf16.xpose.msk.msra.mxu0 %vm312_vm1, %v250_v11 }
  0x15   :  { %253 = vmatprep.subr.bf16.mxu0 %v276_v0 }
  0x1c   :  { %256 = vmatpush3.bf16.xpose.msk.msra.mxu0 %vm312_vm1, %v254_v14 }
  0x1d   :  { %257 = vmatprep.subr.bf16.mxu0 %v276_v0 }
  0x24   :  { %260 = vmatpush3.bf16.xpose.msk.msra.mxu0 %vm312_vm1, %v258_v17 }
  0x25   :  { %261 = vmatprep.subr.bf16.mxu0 %v276_v0 }
  0x2c   :  { %264 = vmatpush3.bf16.xpose.msk.msra.mxu0 %vm312_vm1, %v262_v20 }
  0x2d   :  { %265 = vmatprep.subr.bf16.mxu0 %v276_v0 }
  0x34   :  { %268 = vmatpush3.bf16.xpose.msk.msra.mxu0 %vm312_vm1, %v266_v23 }
  0x35   :  { %269 = vmatprep.subr.bf16.mxu0 %v276_v0 }
  0x3c   :  { %272 = vmatpush3.bf16.xpose.msk.msra.mxu0 %vm312_vm1, %v270_v26 }
  0x43   :  { %239 = vmatmul.mubr.msk.f32.vlgmr.msra.gmra.mrb[0].mxu0 %vm42_vm0, %v17_v27 }
 0x116   :  { %v160_v29 = vpop.f32.mrb[0].mxu0 }
 0x117   :  { %v161_v30 = vadd.f32 %v171_v28, %v160_v29  ;;  %v240_v31 = vpop.f32.mrb[1].mxu0 }
 0x119   :  { %v164_v33 = vmul.f32 0.17677669, %v161_v30 }
 0x11b   :  { %v165_v34 = vadd.f32 %v164_v33, %v34_v32 }
 0x11d   :  { %166 = vst [vmem:[%s391_s4] sm:$0xff] %v165_v34 }

</bundles_post_ra>
